<compile_context>
chip_gen: v7x
topology: tpu7x:2x2x1
jax: 0.10.0
libtpu: 0.0.40
codegen_flags: <defaults>
</compile_context>

<pallas_src>
import functools

import jax
import jax.numpy as jnp
from jax import lax
from jax.experimental import pallas as pl
from jax.experimental.pallas import tpu as pltpu


_CORE_LAYERS = ("initial", "conv1", "conv2", "conv3", "conv4", "conv5",
                "conv6", "final", "adjust1", "adjust2")


# ----------------------------------------------------------------------------
# In-kernel helpers: border masks + im2col via lane rotations
# ----------------------------------------------------------------------------
@functools.cache
def _roll_convention():
    """Probe pltpu.roll once on the active (TPU) backend: +1 if it follows the
    np.roll convention (out[i] = in[i - shift]), -1 otherwise.  The script never
    switches backends, so caching the probe result is safe here."""
    def kernel(x_ref, o_ref):
        o_ref[...] = pltpu.roll(x_ref[...], 1, 1)

    x = lax.broadcasted_iota(jnp.int32, (8, 128), 1)
    y = pl.pallas_call(
        kernel, out_shape=jax.ShapeDtypeStruct((8, 128), jnp.int32))(x)
    return 1 if int(y[0, 1]) == 0 else -1


def _border_masks(H, W, L):
    """9 float32 masks of shape (1, L): validity of each 3x3 tap (pad=1).

    L = B*H*W (B images lane-batched); coordinates are taken modulo H*W, so the
    masks also zero every tap that pltpu.roll would wrap in from an adjacent
    image segment."""
    P = H * W
    pos = lax.broadcasted_iota(jnp.int32, (1, L), 1)
    pin = pos % P
    hh = pin // W
    ww = pin % W
    masks = []
    for kh in range(3):
        for kw in range(3):
            dy, dx = kh - 1, kw - 1
            valid = ((hh + dy >= 0) & (hh + dy < H) &
                     (ww + dx >= 0) & (ww + dx < W))
            masks.append(valid.astype(jnp.float32))
    return masks


def _im2col_3x3(x, H, W, masks, roll_sign):
    """x: (Cin, L) f32.  Returns (9*Cin, L) bf16 im2col (tap-major, channel-minor).

    Each tap is a lane rotation (XLU) + border mask multiply (VPU).  For Cin a
    multiple of 16 (bf16 sublane tile) the taps are cast to bf16 *before* the
    concat, halving col-assembly traffic; tiny Cin (1 / 3) stays f32 until the
    end (negligible, and keeps the concat simple)."""
    cin, L = x.shape
    aligned = (cin % 16 == 0)
    taps = []
    for kh in range(3):
        for kw in range(3):
            dy, dx = kh - 1, kw - 1
            d = dy * W + dx
            t = kh * 3 + kw
            if d == 0:
                xt = x                                   # center tap: no mask
            else:
                shift = (-d if roll_sign == 1 else d) % L
                xt = pltpu.roll(x, shift, 1) * masks[t]
            taps.append(xt.astype(jnp.bfloat16) if aligned else xt)
    col = jnp.concatenate(taps, axis=0)
    return col if aligned else col.astype(jnp.bfloat16)


# ----------------------------------------------------------------------------
# Fused McNet kernel: 3 CoreNets + fusion conv + sigmoid, one grid step / group
# ----------------------------------------------------------------------------
def _mcnet_kernel(x_ref, *refs, H, W, roll_sign):
    # x_ref : (1, 3, L) f32   lane-batched RGB input for this image group
    # refs  : for each layer in _CORE_LAYERS: w (3, Cout, K) bf16, b (3, Cout, 1) f32
    #         then fusion w (3, 27) bf16, fusion b (3, 1) f32, then out_ref (1, 3, L)
    out_ref = refs[-1]
    fw_ref, fb_ref = refs[-3], refs[-2]
    wb = refs[:-3]

    L = x_ref.shape[-1]
    masks = _border_masks(H, W, L)                       # hoisted: shared by all convs
    x_all = x_ref[0]                                     # (3, L) f32

    def c33(t, w, b, relu=True):
        col = _im2col_3x3(t, H, W, masks, roll_sign)
        y = jnp.dot(w, col, preferred_element_type=jnp.float32) + b
        return jnp.maximum(y, 0.0) if relu else y

    def c11(t, w, b):
        return jnp.dot(w, t.astype(jnp.bfloat16),
                       preferred_element_type=jnp.float32) + b

    core_outs = []
    for ch in range(3):                                  # unrolled CoreNets (R, G, B)
        lay = {name: (wb[2 * i][ch], wb[2 * i + 1][ch])  # (Cout, K) bf16, (Cout, 1) f32
               for i, name in enumerate(_CORE_LAYERS)}
        f33 = lambda t, n, relu=True: c33(t, lay[n][0], lay[n][1], relu)
        f11 = lambda t, n: c11(t, lay[n][0], lay[n][1])

        x = x_all[ch:ch + 1, :]                          # (1, L) single-channel image
        x_init = f33(x, "initial", relu=False)
        x1 = f33(x_init, "conv1")
        x2 = f33(x1, "conv2")
        x3 = f33(x2 + f11(x1, "adjust1"), "conv3")
        x4 = f33(x3, "conv4")
        x5 = f33(x4 + f11(x3, "adjust2"), "conv5")
        x6 = f33(x5, "conv3")        # conv3 weights reused (as in PyTorch module)
        x7 = f33(x6 + x5, "conv6")
        x8 = f33(x7, "conv1")        # conv1 weights reused
        core_outs.append(f11(x8 + x7, "final"))          # (1, L)

    comb = jnp.concatenate(core_outs, axis=0)            # (3, L) f32, VMEM-resident
    col = _im2col_3x3(comb, H, W, masks, roll_sign)      # (27, L) bf16
    y = jnp.dot(fw_ref[...], col, preferred_element_type=jnp.float32) + fb_ref[...]
    out_ref[0] = jax.nn.sigmoid(y)                       # (3, L) lane-dense store


# ----------------------------------------------------------------------------
# pallas_call wrapper
# ----------------------------------------------------------------------------
def _mcnet_pallas(x_lane, packed, H, W, roll_sign):
    G, C, L = x_lane.shape                               # (groups, 3, lane_batch*H*W)
    flat = [x_lane]
    in_specs = [pl.BlockSpec((1, C, L), lambda g: (g, 0, 0))]
    for name in _CORE_LAYERS:
        w = packed["core"][name]["w"]                    # (3, Cout, K) bf16
        b = packed["core"][name]["b"]                    # (3, Cout, 1) f32
        flat += [w, b]
        # Constant index maps -> weights are DMA'd into VMEM once (first step only).
        in_specs += [pl.BlockSpec(w.shape, lambda g: (0, 0, 0)),
                     pl.BlockSpec(b.shape, lambda g: (0, 0, 0))]
    fw = packed["fusion"]["w"]                           # (3, 27) bf16
    fb = packed["fusion"]["b"]                           # (3, 1) f32
    flat += [fw, fb]
    in_specs += [pl.BlockSpec(fw.shape, lambda g: (0, 0)),
                 pl.BlockSpec(fb.shape, lambda g: (0, 0))]

    return pl.pallas_call(
        functools.partial(_mcnet_kernel, H=H, W=W, roll_sign=roll_sign),
        out_shape=jax.ShapeDtypeStruct((G, 3, L), jnp.float32),
        grid_spec=pltpu.PrefetchScalarGridSpec(
            num_scalar_prefetch=0,
            grid=(G,),
            in_specs=in_specs,
            out_specs=pl.BlockSpec((1, 3, L), lambda g: (g, 0, 0)),
        ),
        compiler_params=pltpu.CompilerParams(
            dimension_semantics=("parallel",),
            vmem_limit_bytes=32 * 1024 * 1024),
    )(*flat)


@functools.partial(jax.jit, static_argnums=(2, 3))
def _mcnet_jit(packed, x_nchw, lane_batch, roll_sign):
    N, C, H, W = x_nchw.shape                            # C == 3
    P = H * W
    B = lane_batch
    G = N // B
    # Lane-batch B images per grid step: (G, 3, B*P), image b in lanes [b*P,(b+1)*P).
    x = x_nchw.reshape(G, B, C, P).astype(jnp.float32)
    x = jnp.transpose(x, (0, 2, 1, 3)).reshape(G, C, B * P)
    out = _mcnet_pallas(x, packed, H, W, roll_sign)      # (G, 3, B*P)
    out = jnp.transpose(out.reshape(G, 3, B, P), (0, 2, 1, 3))  # (G, B, 3, P)
    return out.reshape(N, C, H, W)


def mcnet_forward(packed, x_nchw, lane_batch=1):         # x: (N, 3, H, W) NCHW
    N, _, H, W = x_nchw.shape
    assert N % lane_batch == 0, "batch must be divisible by lane_batch"
    assert (lane_batch * H * W) % 128 == 0, "lane width must be a multiple of 128"
    return _mcnet_jit(packed, x_nchw, lane_batch, _roll_convention())


# ----------------------------------------------------------------------------
# Parameters (deterministic, synthetic) + packing into kernel layout
# ----------------------------------------------------------------------------
def _conv_params(key, kh, kw, cin, cout):
    kw_, kb_ = jax.random.split(key)
    fan_in = kh * kw * cin
    w = jax.random.normal(kw_, (kh, kw, cin, cout), jnp.float32) / jnp.sqrt(
        jnp.float32(fan_in))
    b = jax.random.normal(kb_, (cout,), jnp.float32) * 0.01
    return {"w": w, "b": b}


def make_corenet_params(key):
    ks = jax.random.split(key, 10)
    return {
        "initial": _conv_params(ks[0], 3, 3, 1, 32),
        "conv1":   _conv_params(ks[1], 3, 3, 32, 32),
        "conv2":   _conv_params(ks[2], 3, 3, 32, 64),
        "conv3":   _conv_params(ks[3], 3, 3, 64, 64),
        "conv4":   _conv_params(ks[4], 3, 3, 64, 128),
        "conv5":   _conv_params(ks[5], 3, 3, 128, 64),
        "conv6":   _conv_params(ks[6], 3, 3, 64, 32),
        "final":   _conv_params(ks[7], 1, 1, 32, 1),
        "adjust1": _conv_params(ks[8], 1, 1, 32, 64),
        "adjust2": _conv_params(ks[9], 1, 1, 64, 128),
    }


def make_mcnet_params(key):
    k1, k2, k3, k4 = jax.random.split(key, 4)
    return {
        "channel1": make_corenet_params(k1),
        "channel2": make_corenet_params(k2),
        "channel3": make_corenet_params(k3),
        "final_conv": _conv_params(k4, 3, 3, 3, 3),
    }


def _kernel_weight(w_hwio):
    """(KH,KW,Cin,Cout) f32 -> (Cout, KH*KW*Cin) bf16, matching _im2col_3x3's
    tap-major / channel-minor stacking order (exact K, no channel padding)."""
    kh, kw, cin, cout = w_hwio.shape
    w = jnp.transpose(w_hwio, (3, 0, 1, 2)).reshape(cout, kh * kw * cin)
    return w.astype(jnp.bfloat16)


def pack_mcnet_params(params):
    chans = (params["channel1"], params["channel2"], params["channel3"])
    core = {}
    for name in _CORE_LAYERS:
        w = jnp.stack([_kernel_weight(c[name]["w"]) for c in chans], 0)   # (3,Cout,K)
        b = jnp.stack([c[name]["b"] for c in chans], 0)[:, :, None]       # (3,Cout,1)
        core[name] = {"w": w, "b": b}
    fw = _kernel_weight(params["final_conv"]["w"])                        # (3, 27)
    fb = params["final_conv"]["b"][:, None]                               # (3, 1)
    return {"core": core, "fusion": {"w": fw, "b": fb}}


# ----------------------------------------------------------------------------
# Pure-XLA reference (f32) mirroring the PyTorch module, for validation
# ----------------------------------------------------------------------------
def _conv_ref(x, w, b, pad):
    y = lax.conv_general_dilated(
        x, w, window_strides=(1, 1), padding=[(pad, pad), (pad, pad)],
        dimension_numbers=("NCHW", "HWIO", "NCHW"))
    return y + b.reshape(1, -1, 1, 1)


def _corenet_ref(p, x):
    relu = jax.nn.relu
    x_init = _conv_ref(x, p["initial"]["w"], p["initial"]["b"], 1)
    x1 = relu(_conv_ref(x_init, p["conv1"]["w"], p["conv1"]["b"], 1))
    x2 = relu(_conv_ref(x1, p["conv2"]["w"], p["conv2"]["b"], 1))
    x3 = relu(_conv_ref(x2 + _conv_ref(x1, p["adjust1"]["w"], p["adjust1"]["b"], 0),
                        p["conv3"]["w"], p["conv3"]["b"], 1))
    x4 = relu(_conv_ref(x3, p["conv4"]["w"], p["conv4"]["b"], 1))
    x5 = relu(_conv_ref(x4 + _conv_ref(x3, p["adjust2"]["w"], p["adjust2"]["b"], 0),
                        p["conv5"]["w"], p["conv5"]["b"], 1))
    x6 = relu(_conv_ref(x5, p["conv3"]["w"], p["conv3"]["b"], 1))
    x7 = relu(_conv_ref(x6 + x5, p["conv6"]["w"], p["conv6"]["b"], 1))
    x8 = relu(_conv_ref(x7, p["conv1"]["w"], p["conv1"]["b"], 1))
    return _conv_ref(x8 + x7, p["final"]["w"], p["final"]["b"], 0)


def mcnet_reference(params, x):
    r = _corenet_ref(params["channel1"], x[:, 0:1])
    g = _corenet_ref(params["channel2"], x[:, 1:2])
    b = _corenet_ref(params["channel3"], x[:, 2:3])
    comb = jnp.concatenate([r, g, b], axis=1)
    return jax.nn.sigmoid(_conv_ref(comb, params["final_conv"]["w"],
                                    params["final_conv"]["b"], 1))


# ----------------------------------------------------------------------------
if __name__ == "__main__":
    key = jax.random.PRNGKey(0)
    k_params, k_x = jax.random.split(key)
    params = make_mcnet_params(k_params)          # f32 reference params
    packed = pack_mcnet_params(params)            # kernel-layout (bf16 weights)

    # Small deterministic input: batch=4, 3 channels (RGB), 16x16 spatial.
    # lane_batch=2 packs 2 images per grid step (L = 512 lanes) while keeping
    # grid=(2,) so both v7x TensorCores have work.
    x = jax.random.uniform(k_x, (4, 3, 16, 16), jnp.float32)

    out = mcnet_forward(packed, x, lane_batch=2)
    jax.block_until_ready(out)
    assert out.shape == (4, 3, 16, 16), out.shape
    assert bool(jnp.all(out > 0.0)) and bool(jnp.all(out < 1.0))  # sigmoid range

    # Cross-check vs pure-XLA f32 reference (kernel uses bf16 MXU matmuls with
    # f32 accumulation -> loose tolerance).
    ref = mcnet_reference(params, x)
    err = float(jnp.max(jnp.abs(out - ref)))
    assert err < 5e-2, f"max |pallas - reference| = {err}"
    print("KERNEL_OK")
</pallas_src>

<mosaic_0001>
module attributes {stable_mosaic.version = 11 : i64} {
  func.func @kernel(%arg0: memref<8x128xi32, #tpu.memory_space<vmem>>, %arg1: memref<8x128xi32, #tpu.memory_space<vmem>>) attributes {dimension_semantics = [], scalar_prefetch = 0 : i64, scratch_operands = 0 : i64, tpu.core_type = #tpu.core_type<tc>} {
    %c0 = arith.constant 0 : index
    %c0_0 = arith.constant 0 : index
    %0 = vector.load %arg0[%c0, %c0_0] : memref<8x128xi32, #tpu.memory_space<vmem>>, vector<8x128xi32>
    %c1_i32 = arith.constant 1 : i32
    %1 = tpu.dynamic_rotate %0 by %c1_i32 dim 1 : vector<8x128xi32>, i32 -> vector<8x128xi32>
    %c0_1 = arith.constant 0 : index
    %c0_2 = arith.constant 0 : index
    %2 = vector.load %arg1[%c0_1, %c0_2] : memref<8x128xi32, #tpu.memory_space<vmem>>, vector<8x128xi32>
    tpu.vector_store %arg1[%c0_1, %c0_2], %1 {strides = array<i32>} : memref<8x128xi32, #tpu.memory_space<vmem>>, vector<8x128xi32>,
    return
  }
}

</mosaic_0001>

<bundles_post_ra>
// kernel: tpu_custom_call.1
= control target key start
LH: loop header
LB: loop body
LE: loop exit
PB: predicated region body
PF: predicated region fallthrough
CT: control target
= control target key end

     0   :  { %6 = vsyncpa [#allocation3], 0  ;;  %s128_s0 = inlined_call_operand.hbm [shape: s32[8,128], index: 0, kind: input, shape index: {}]   ;;  %s129_s1 = inlined_call_operand.hbm [shape: s32[8,128], index: 1, kind: output, shape index: {}]  }
   0x1   :  { %7 = vsyncpa [#allocation4], 0  ;;  %s91_s6 = smov [#allocation2]   ;;  %s43_s10 = scalar_lea.hbm %s128_s0, 128 }
   0x2   :  { %s14_s7 = sshll.u32 %s91_s6, 4  ;;  %p44_p0 = scmp.ne.s32.totalorder %s128_s0, %s43_s10  ;;  %s15_s7 = int_to_ptr.vmem [resolvable:$true] %s14_s7 }
   0x3   :  { %p47_p1 = scmp.lt.u32.totalorder %s43_s10, %s128_s0 }
   0x5   :  { %p49_p2 = pnand %p47_p1, %p44_p0 }
   0x7   :  { %52 = shalt.err (!%p49_p2)
}
   0x8   :  { %s53_s15 = scalar_lea.vmem %s15_s7, 128  ;;  %p58_p4 = scmp.lt.s32.totalorder %s15_s7, %s15_s7 }
   0x9   :  { %p54_p3 = scmp.ne.s32.totalorder %s15_s7, %s53_s15  ;;  %p59_p5 = scmp.lt.s32.totalorder %s53_s15, %s53_s15 }
   0xb   :  { %p60_p6 = por %p59_p5, %p58_p4 }
   0xd   :  { %p61_p7 = pnand %p60_p6, %p54_p3 }
   0xf   :  { %64 = shalt.err (!%p61_p7)
}
  0x10   :  { %17 = dma.hbm_to_vmem [thread:$0]  %s128_s0, 128, %s15_s7, [#allocation3]  }
  0x11   :  { %87 = dma.done.wait [#allocation3], 128  }
  0x12   :  { %88 = vsyncadd [#allocation3], 4294967168  ;;  %v21_v0 = vld [vmem:[#allocation2] sm:$0xff]  ;;  %s92_s18 = smov 1   ;;  %s93_s19 = smov [#allocation5]  }
  0x13   :  { %22 = vrot.lane.b32.xlu0 %v21_v0, %s92_s18  ;;  %s31_s20 = sshll.u32 %s93_s19, 4  ;;  %s32_s20 = int_to_ptr.vmem [resolvable:$true] %s31_s20 }
  0x14   :  { %s65_s21 = scalar_lea.vmem %s32_s20, 128  ;;  %p70_p9 = scmp.lt.s32.totalorder %s32_s20, %s32_s20 }
  0x15   :  { %p66_p8 = scmp.ne.s32.totalorder %s32_s20, %s65_s21  ;;  %p71_p10 = scmp.lt.s32.totalorder %s65_s21, %s65_s21 }
  0x17   :  { %p72_p11 = por %p71_p10, %p70_p9 }
  0x19   :  { %p73_p12 = pnand %p72_p11, %p66_p8 }
  0x85   :  { %v23_v1 = vpop.permute.xlu0 %22 }
  0x86   :  { %24 = vst [vmem:[#allocation5] sm:$0xff] %v23_v1 }
  0x87   :  { %76 = shalt.err (!%p73_p12)
}
  0x88   :  { %s77_s0 = scalar_lea.hbm %s129_s1, 128 }
  0x89   :  { %p78_p13 = scmp.ne.s32.totalorder %s129_s1, %s77_s0  ;;  %p81_p0 = scmp.lt.u32.totalorder %s77_s0, %s129_s1 }
  0x8b   :  { %p83_p1 = pnand %p81_p0, %p78_p13 }
  0x8d   :  { %86 = shalt.err (!%p83_p1)
}
  0x8e   :  { %34 = dma.vmem_to_hbm [thread:$0]  %s32_s20, 128, %s129_s1, [#allocation4]  }
  0x8f   :  { %89 = dma.done.wait [#allocation4], 128  }
  0x90   :  { %90 = vsyncadd [#allocation4], 4294967168 }
  0x91   :  { %38 = vsyncpa [#allocation3], 1 }
  0x92   :  { %39 = vsyncpa [#allocation4], 1 }

</bundles_post_ra>
